<compile_context>
chip_gen: v6e
topology: v6e:2x2x1
jax: 0.10.0
libtpu: 0.0.40
codegen_flags: <defaults>
</compile_context>

<pallas_src>
import functools

import jax
import jax.numpy as jnp
from jax.experimental import pallas as pl
from jax.experimental.pallas import tpu as pltpu


def qnetwork_kernel(x_ref, w1_ref, b1_ref, w2_ref, b2_ref, w3_ref, b3_ref, o_ref,
                    *, epi_dtype):
    # Transposed layout: x_ref is (state, TILE_B) bf16; weights are PyTorch (out, in)
    # bf16; b1/b2 are (out, 1) in `epi_dtype`, b3 is (A, 1) f32.  Biases broadcast
    # along the lane (batch) dim.
    x = x_ref[...]                                                         # (S, TB) bf16
    h1 = jnp.dot(w1_ref[...], x, preferred_element_type=jnp.float32)      # (H, TB) f32
    h1 = jnp.maximum(h1.astype(epi_dtype) + b1_ref[...], 0).astype(jnp.bfloat16)
    h2 = jnp.dot(w2_ref[...], h1, preferred_element_type=jnp.float32)     # (H, TB) f32
    h2 = jnp.maximum(h2.astype(epi_dtype) + b2_ref[...], 0).astype(jnp.bfloat16)
    q = jnp.dot(w3_ref[...], h2, preferred_element_type=jnp.float32)      # (A, TB) f32
    o_ref[...] = (q + b3_ref[...]).astype(o_ref.dtype)


def _round_up(n, m):
    return ((n + m - 1) // m) * m


def _cdiv(a, b):
    return (a + b - 1) // b


def _default_epilogue_dtype():
    """bf16 epilogue only on chips with bf16 VALUs (v6e/v7x+); f32 on v5e and older."""
    try:
        kind = jax.devices()[0].device_kind.lower()
    except Exception:
        return jnp.float32
    if any(tag in kind for tag in ("v2", "v3", "v4", "v5")):
        return jnp.float32
    return jnp.bfloat16


def qnetwork_forward(x, params, tile_b=4096, epilogue_dtype=None):
    """x: (B, state_size) float32.  params: PyTorch-layout dict (w: (out, in), b: (out,))."""
    B, S = x.shape
    H = params["w1"].shape[0]
    A = params["w3"].shape[0]

    if epilogue_dtype is None:
        epilogue_dtype = _default_epilogue_dtype()

    # --- batch tiling --------------------------------------------------------
    # Round the requested tile to a multiple of 128, derive the number of grid
    # steps from the 128-padded batch, then re-derive the tile so that padding
    # waste is <128 rows per step.  Force >=2 steps when the batch allows it so
    # the "parallel" axis shards across v7x's two TensorCores.
    Bp128 = _round_up(B, 128)
    tb_req = max(128, _round_up(min(int(tile_b), Bp128), 128))
    n_steps = _cdiv(Bp128, tb_req)
    if n_steps == 1 and Bp128 >= 256:
        n_steps = 2
    tb = _round_up(_cdiv(Bp128, n_steps), 128)
    Bp = tb * n_steps

    # --- wrapper-side layout plumbing (single fused pass over x) --------------
    # Cast to bf16 first (half the bytes through the transpose/pad), then present
    # a (features, batch) lane-dense slab to the kernel.
    bf16 = jnp.bfloat16
    x_t = x.astype(bf16).T                                                 # (S, B) bf16
    if Bp != B:
        x_t = jnp.pad(x_t, ((0, 0), (0, Bp - B)))                          # (S, Bp) bf16

    w1 = params["w1"].astype(bf16)                                         # (H, S)
    w2 = params["w2"].astype(bf16)                                         # (H, H)
    w3 = params["w3"].astype(bf16)                                         # (A, H)
    b1 = params["b1"].reshape(H, 1).astype(epilogue_dtype)
    b2 = params["b2"].reshape(H, 1).astype(epilogue_dtype)
    b3 = params["b3"].reshape(A, 1).astype(jnp.float32)

    const = lambda shape: pl.BlockSpec(shape, lambda i: (0,) * len(shape))
    kernel = functools.partial(qnetwork_kernel, epi_dtype=epilogue_dtype)

    out_t = pl.pallas_call(
        kernel,
        out_shape=jax.ShapeDtypeStruct((A, Bp), jnp.float32),
        grid=(n_steps,),
        in_specs=[
            pl.BlockSpec((S, tb), lambda i: (0, i)),   # x tile: batch on lanes
            const((H, S)), const((H, 1)),              # fc1 (VMEM-resident across steps)
            const((H, H)), const((H, 1)),              # fc2
            const((A, H)), const((A, 1)),              # fc3
        ],
        out_specs=pl.BlockSpec((A, tb), lambda i: (0, i)),
        compiler_params=pltpu.CompilerParams(
            dimension_semantics=("parallel",),
        ),
    )(x_t, w1, b1, w2, b2, w3, b3)

    return out_t[:, :B].T                                                  # (B, A) f32


def init_params(key, state_size, action_size, hidden=64):
    """PyTorch nn.Linear default init: U(-1/sqrt(fan_in), 1/sqrt(fan_in)); (out, in) layout."""
    keys = jax.random.split(key, 6)

    def linear(kw, kb, fan_in, fan_out):
        bound = 1.0 / jnp.sqrt(jnp.float32(fan_in))
        w = jax.random.uniform(kw, (fan_out, fan_in), jnp.float32, -bound, bound)
        b = jax.random.uniform(kb, (fan_out,), jnp.float32, -bound, bound)
        return w, b

    w1, b1 = linear(keys[0], keys[1], state_size, hidden)
    w2, b2 = linear(keys[2], keys[3], hidden, hidden)
    w3, b3 = linear(keys[4], keys[5], hidden, action_size)
    return {"w1": w1, "b1": b1, "w2": w2, "b2": b2, "w3": w3, "b3": b3}


def reference_forward_f32(x, p):
    """Pure-f32 reference matching the PyTorch module semantics."""
    h1 = jnp.maximum(x @ p["w1"].T + p["b1"], 0.0)
    h2 = jnp.maximum(h1 @ p["w2"].T + p["b2"], 0.0)
    return h2 @ p["w3"].T + p["b3"]


def reference_forward_mixed(x, p, epilogue_dtype=jnp.float32):
    """Mirrors the kernel numerics: bf16 matmul inputs, f32 accumulation, epilogue in
    `epilogue_dtype` (bias add + ReLU), bf16 hand-off between layers, f32 output bias."""
    bf16, f32 = jnp.bfloat16, jnp.float32
    epi = epilogue_dtype
    h1 = jnp.dot(x.astype(bf16), p["w1"].T.astype(bf16), preferred_element_type=f32)
    h1 = jnp.maximum(h1.astype(epi) + p["b1"].astype(epi), 0).astype(bf16)
    h2 = jnp.dot(h1, p["w2"].T.astype(bf16), preferred_element_type=f32)
    h2 = jnp.maximum(h2.astype(epi) + p["b2"].astype(epi), 0).astype(bf16)
    q = jnp.dot(h2, p["w3"].T.astype(bf16), preferred_element_type=f32)
    return q + p["b3"].astype(f32)


if __name__ == "__main__":
    key = jax.random.PRNGKey(0)
    k_params, k_x = jax.random.split(key)

    batch = 8
    state_size = 8
    action_size = 4

    params = init_params(k_params, state_size, action_size)
    x = jax.random.normal(k_x, (batch, state_size), jnp.float32)

    fwd = jax.jit(qnetwork_forward)
    out = jax.block_until_ready(fwd(x, params))

    assert out.shape == (batch, action_size)

    # Tight check vs a reference that mirrors the kernel's mixed precision
    # (including the device-dependent epilogue dtype).
    epi = _default_epilogue_dtype()
    ref_mixed = reference_forward_mixed(x, params, epi)
    assert jnp.allclose(out, ref_mixed, atol=2e-2, rtol=2e-2), "mismatch vs mixed-precision ref"

    # Loose sanity check vs the pure-f32 PyTorch-equivalent forward.
    ref_f32 = reference_forward_f32(x, params)
    assert jnp.allclose(out, ref_f32, atol=1e-1, rtol=1e-1), "mismatch vs f32 ref"

    print("KERNEL_OK")
</pallas_src>

<mosaic_0001>
module attributes {stable_mosaic.version = 11 : i64} {
  func.func @qnetwork_kernel(%arg0: i32, %arg1: memref<8x128xbf16, #tpu.memory_space<vmem>>, %arg2: memref<64x8xbf16, #tpu.memory_space<vmem>>, %arg3: memref<64x1xbf16, #tpu.memory_space<vmem>>, %arg4: memref<64x64xbf16, #tpu.memory_space<vmem>>, %arg5: memref<64x1xbf16, #tpu.memory_space<vmem>>, %arg6: memref<4x64xbf16, #tpu.memory_space<vmem>>, %arg7: memref<4x1xf32, #tpu.memory_space<vmem>>, %arg8: memref<4x128xf32, #tpu.memory_space<vmem>>) attributes {dimension_semantics = [#tpu.dimension_semantics<parallel>], iteration_bounds = array<i64: 1>, scalar_prefetch = 0 : i64, scratch_operands = 0 : i64, tpu.core_type = #tpu.core_type<tc>, window_params = [{transform_indices = @transform_0, window_bounds = array<i64: 8, 128>}, {pipeline_mode = #tpu.pipeline_mode<synchronous>, transform_indices = @transform_1, window_bounds = array<i64: 64, 8>}, {pipeline_mode = #tpu.pipeline_mode<synchronous>, transform_indices = @transform_2, window_bounds = array<i64: 64, 1>}, {pipeline_mode = #tpu.pipeline_mode<synchronous>, transform_indices = @transform_3, window_bounds = array<i64: 64, 64>}, {pipeline_mode = #tpu.pipeline_mode<synchronous>, transform_indices = @transform_4, window_bounds = array<i64: 64, 1>}, {pipeline_mode = #tpu.pipeline_mode<synchronous>, transform_indices = @transform_5, window_bounds = array<i64: 4, 64>}, {pipeline_mode = #tpu.pipeline_mode<synchronous>, transform_indices = @transform_6, window_bounds = array<i64: 4, 1>}, {transform_indices = @transform_7, window_bounds = array<i64: 4, 128>}]} {
    %c0 = arith.constant 0 : index
    %c0_0 = arith.constant 0 : index
    %0 = vector.load %arg1[%c0, %c0_0] : memref<8x128xbf16, #tpu.memory_space<vmem>>, vector<8x128xbf16>
    %c0_1 = arith.constant 0 : index
    %c0_2 = arith.constant 0 : index
    %1 = vector.load %arg2[%c0_1, %c0_2] : memref<64x8xbf16, #tpu.memory_space<vmem>>, vector<64x8xbf16>
    %cst = arith.constant dense<0.000000e+00> : vector<64x128xf32>
    %2 = tpu.matmul %1, %0, %cst {dimension_numbers = #tpu.dot_dimension_numbers<[1], [0], [0], [1], [0, 0, 1, 1], [], []>} : vector<64x8xbf16>, vector<8x128xbf16>, vector<64x128xf32> -> vector<64x128xf32>
    %3 = arith.truncf %2 : vector<64x128xf32> to vector<64x128xbf16>
    %c0_3 = arith.constant 0 : index
    %c0_4 = arith.constant 0 : index
    %4 = vector.load %arg3[%c0_3, %c0_4] : memref<64x1xbf16, #tpu.memory_space<vmem>>, vector<64x1xbf16>
    %5 = vector.broadcast %4 : vector<64x1xbf16> to vector<64x128xbf16>
    %6 = arith.addf %3, %5 : vector<64x128xbf16>
    %cst_5 = arith.constant 0.000000e+00 : bf16
    %7 = vector.broadcast %cst_5 : bf16 to vector<64x128xbf16>
    %8 = arith.maximumf %6, %7 : vector<64x128xbf16>
    %c0_6 = arith.constant 0 : index
    %c0_7 = arith.constant 0 : index
    %9 = vector.load %arg4[%c0_6, %c0_7] : memref<64x64xbf16, #tpu.memory_space<vmem>>, vector<64x64xbf16>
    %cst_8 = arith.constant dense<0.000000e+00> : vector<64x128xf32>
    %10 = tpu.matmul %9, %8, %cst_8 {dimension_numbers = #tpu.dot_dimension_numbers<[1], [0], [0], [1], [0, 0, 1, 1], [], []>} : vector<64x64xbf16>, vector<64x128xbf16>, vector<64x128xf32> -> vector<64x128xf32>
    %11 = arith.truncf %10 : vector<64x128xf32> to vector<64x128xbf16>
    %c0_9 = arith.constant 0 : index
    %c0_10 = arith.constant 0 : index
    %12 = vector.load %arg5[%c0_9, %c0_10] : memref<64x1xbf16, #tpu.memory_space<vmem>>, vector<64x1xbf16>
    %13 = vector.broadcast %12 : vector<64x1xbf16> to vector<64x128xbf16>
    %14 = arith.addf %11, %13 : vector<64x128xbf16>
    %cst_11 = arith.constant 0.000000e+00 : bf16
    %15 = vector.broadcast %cst_11 : bf16 to vector<64x128xbf16>
    %16 = arith.maximumf %14, %15 : vector<64x128xbf16>
    %c0_12 = arith.constant 0 : index
    %c0_13 = arith.constant 0 : index
    %17 = vector.load %arg6[%c0_12, %c0_13] : memref<4x64xbf16, #tpu.memory_space<vmem>>, vector<4x64xbf16>
    %cst_14 = arith.constant dense<0.000000e+00> : vector<4x128xf32>
    %18 = tpu.matmul %17, %16, %cst_14 {dimension_numbers = #tpu.dot_dimension_numbers<[1], [0], [0], [1], [0, 0, 1, 1], [], []>} : vector<4x64xbf16>, vector<64x128xbf16>, vector<4x128xf32> -> vector<4x128xf32>
    %c0_15 = arith.constant 0 : index
    %c0_16 = arith.constant 0 : index
    %19 = vector.load %arg7[%c0_15, %c0_16] : memref<4x1xf32, #tpu.memory_space<vmem>>, vector<4x1xf32>
    %20 = vector.broadcast %19 : vector<4x1xf32> to vector<4x128xf32>
    %21 = arith.addf %18, %20 : vector<4x128xf32>
    %c0_17 = arith.constant 0 : index
    %c0_18 = arith.constant 0 : index
    %22 = vector.load %arg8[%c0_17, %c0_18] : memref<4x128xf32, #tpu.memory_space<vmem>>, vector<4x128xf32>
    tpu.vector_store %arg8[%c0_17, %c0_18], %21 {strides = array<i32>} : memref<4x128xf32, #tpu.memory_space<vmem>>, vector<4x128xf32>,
    return
  }
  func.func @transform_0(%arg0: i32) -> (i32, i32) {
    %c0_i32 = arith.constant 0 : i32
    %c0_i32_0 = arith.constant 0 : i32
    return %c0_i32, %arg0 : i32, i32
  }
  func.func @transform_1(%arg0: i32) -> (i32, i32) {
    %c0_i32 = arith.constant 0 : i32
    %c0_i32_0 = arith.constant 0 : i32
    %c0_i32_1 = arith.constant 0 : i32
    return %c0_i32, %c0_i32_0 : i32, i32
  }
  func.func @transform_2(%arg0: i32) -> (i32, i32) {
    %c0_i32 = arith.constant 0 : i32
    %c0_i32_0 = arith.constant 0 : i32
    %c0_i32_1 = arith.constant 0 : i32
    return %c0_i32, %c0_i32_0 : i32, i32
  }
  func.func @transform_3(%arg0: i32) -> (i32, i32) {
    %c0_i32 = arith.constant 0 : i32
    %c0_i32_0 = arith.constant 0 : i32
    %c0_i32_1 = arith.constant 0 : i32
    return %c0_i32, %c0_i32_0 : i32, i32
  }
  func.func @transform_4(%arg0: i32) -> (i32, i32) {
    %c0_i32 = arith.constant 0 : i32
    %c0_i32_0 = arith.constant 0 : i32
    %c0_i32_1 = arith.constant 0 : i32
    return %c0_i32, %c0_i32_0 : i32, i32
  }
  func.func @transform_5(%arg0: i32) -> (i32, i32) {
    %c0_i32 = arith.constant 0 : i32
    %c0_i32_0 = arith.constant 0 : i32
    %c0_i32_1 = arith.constant 0 : i32
    return %c0_i32, %c0_i32_0 : i32, i32
  }
  func.func @transform_6(%arg0: i32) -> (i32, i32) {
    %c0_i32 = arith.constant 0 : i32
    %c0_i32_0 = arith.constant 0 : i32
    %c0_i32_1 = arith.constant 0 : i32
    return %c0_i32, %c0_i32_0 : i32, i32
  }
  func.func @transform_7(%arg0: i32) -> (i32, i32) {
    %c0_i32 = arith.constant 0 : i32
    %c0_i32_0 = arith.constant 0 : i32
    return %c0_i32, %arg0 : i32, i32
  }
}

</mosaic_0001>

<bundles_post_ra>
// kernel: qnetwork_forward.1
= control target key start
LH: loop header
LB: loop body
LE: loop exit
PB: predicated region body
PF: predicated region fallthrough
CT: control target
= control target key end

     0   :  { %vm69_vm0 = vcmask 1043456   ;;  %vm56_vm1 = vcmask 64512   ;;  %v675_v1 = vmov 0   ;;  %vm306_vm2 = vcmask 523264   ;;  %s840_s0 = inlined_call_operand.vmem [shape: bf16[8,128], index: 0, kind: input, shape index: {}]   ;;  %s841_s1 = inlined_call_operand.vmem [shape: bf16[64,8], index: 1, kind: input, shape index: {}]   ;;  %s842_s2 = inlined_call_operand.vmem [shape: bf16[64,1], index: 2, kind: input, shape index: {}]   ;;  %s843_s4 = inlined_call_operand.vmem [shape: bf16[64,1], index: 4, kind: input, shape index: {}]   ;;  %s844_s6 = inlined_call_operand.vmem [shape: f32[4,1], index: 6, kind: input, shape index: {}]   ;;  %s845_s3 = inlined_call_operand.vmem [shape: bf16[64,64], index: 3, kind: input, shape index: {}]   ;;  %s846_s5 = inlined_call_operand.vmem [shape: bf16[4,64], index: 5, kind: input, shape index: {}]   ;;  %s847_s7 = inlined_call_operand.vmem [shape: f32[4,128], index: 7, kind: output, shape index: {}]  }
   0x1   :  { %v27_v0 = vld [vmem:[%s840_s0] sm:$0xf]  ;;  %665 = vset.pattern.permute.xlu0 %v675_v1  ;;  %666 = vset.pattern.permute.xlu1 %v675_v1  ;;  %v668_v4 = vld [vmem:[%s841_s1 + $0x8] sm:$0xff]   ;;  %v669_v5 = vld [vmem:[%s841_s1 + $0x10] sm:$0xff]   ;;  %v676_v27 = vmov 839922192   ;;  %v158_v29 = vlaneseq }
   0x2   :  { %660 = vmatprep.subr.msk.bf16.mxu0 %vm69_vm0, %v27_v0  ;;  %v71_v2 = vsel %vm69_vm0, %v27_v0, 0  ;;  %v667_v3 = vld [vmem:[%s841_s1] sm:$0xff]   ;;  %v148_v6 = vld [vmem:[%s842_s2 + $0x18] sm:$0xf]  ;;  %v146_v7 = vld [vmem:[%s842_s2 + $0x10] sm:$0xf]  ;;  %v156_v28 = vunpack.c.l.s4 %v676_v27 }
   0x3   :  { %623 = vmatpush3.bf16.msra.mxu0 %v71_v2  ;;  %624 = vmatprep.mubr.msk.bf16.mxu0 %vm56_vm1, %v667_v3  ;;  %v149_v8 = vld [vmem:[%s842_s2 + $0x1c] sm:$0xf]  ;;  %v147_v9 = vld [vmem:[%s842_s2 + $0x14] sm:$0xf]  ;;  %v144_v11 = vld [vmem:[%s842_s2 + $0x8] sm:$0xf] }
   0x4   :  { %224 = vperm.xlu0 %665, %v148_v6   ;;  %200 = vperm.xlu1 %666, %v146_v7   ;;  %v670_v10 = vld [vmem:[%s841_s1 + $0x18] sm:$0xff]   ;;  %v145_v12 = vld [vmem:[%s842_s2 + $0xc] sm:$0xf]  ;;  %v142_v13 = vld [vmem:[%s842_s2] sm:$0xf]  ;;  %v157_v32 = vunpack.c.0.s8 %v156_v28  ;;  %v159_v33 = vshrl.u32 %v158_v29, 7 }
   0x5   :  { %v143_v14 = vld [vmem:[%s842_s2 + $0x4] sm:$0xf]  ;;  %v394_v15 = vld [vmem:[%s843_s4 + $0x18] sm:$0xf]  ;;  %v395_v16 = vld [vmem:[%s843_s4 + $0x1c] sm:$0xf] }
   0x6   :  { %625 = vmatmul.mubr.msk.bf16.vlgmr.msra.gmra.mxu0 %vm56_vm1, %v668_v4  ;;  %v392_v17 = vld [vmem:[%s843_s4 + $0x10] sm:$0xf]  ;;  %v393_v18 = vld [vmem:[%s843_s4 + $0x14] sm:$0xf]  ;;  %v390_v19 = vld [vmem:[%s843_s4 + $0x8] sm:$0xf]  ;;  %v795_v37 = vsub.s32 %v157_v32, %v159_v33 }
   0x7   :  { %628 = vmatprep.mubr.msk.bf16.mxu0 %vm56_vm1, %v669_v5  ;;  %v391_v20 = vld [vmem:[%s843_s4 + $0xc] sm:$0xf]  ;;  %v388_v21 = vld [vmem:[%s843_s4] sm:$0xf]  ;;  %v389_v22 = vld [vmem:[%s843_s4 + $0x4] sm:$0xf] }
   0x8   :  { %236 = vperm.xlu0 %665, %v149_v8   ;;  %212 = vperm.xlu1 %666, %v147_v9   ;;  %v525_v23 = vld [vmem:[%s844_s6] sm:$0xf]  ;;  %v672_v8 = vld [vmem:[%s845_s3 + $0x8] sm:$0xff]   ;;  %v673_v9 = vld [vmem:[%s845_s3 + $0x10] sm:$0xff]   ;;  %vm678_vm3 = vmmov 0  }
   0x9   :  { %v671_v24 = vld [vmem:[%s845_s3] sm:$0xff]  }
   0xa   :  { %640 = vmatprep.mubr.msk.bf16.mxu1 %vm306_vm2, %v671_v24 }
   0xc   :  { %176 = vperm.xlu0 %665, %v144_v11   ;;  %188 = vperm.xlu1 %666, %v145_v12   ;;  %v677_v11 = vmov 0.0  }
   0xd   :  { %648 = vmatprep.subr.bf16.mxu0 %v677_v11 }
   0xe   :  { %629 = vmatmul.mubr.msk.bf16.gmra.mxu0 %vm56_vm1, %v670_v10  ;;  %v674_v10 = vld [vmem:[%s845_s3 + $0x18] sm:$0xff]  }
   0xf   :  { %656 = vmatprep.mubr.msk.bf16.mxu0 %vm678_vm3, %v677_v11 }
  0x10   :  { %152 = vperm.xlu0 %665, %v142_v13   ;;  %164 = vperm.xlu1 %666, %v143_v14  }
  0x14   :  { %470 = vperm.xlu0 %665, %v394_v15   ;;  %482 = vperm.xlu1 %666, %v395_v16  }
  0x18   :  { %446 = vperm.xlu0 %665, %v392_v17   ;;  %458 = vperm.xlu1 %666, %v393_v18  }
  0x1c   :  { %422 = vperm.xlu0 %665, %v390_v19   ;;  %434 = vperm.xlu1 %666, %v391_v20  }
  0x20   :  { %398 = vperm.xlu0 %665, %v388_v21   ;;  %410 = vperm.xlu1 %666, %v389_v22  }
  0x24   :  { %528 = vperm.xlu0 %665, %v525_v23  }
  0x7f   :  { %v225_v25 = vpop.permute.xlu0 %224  ;;  %v201_v26 = vpop.permute.xlu1 %200 }
  0x80   :  { %v233_v42 = vrot.slane %v225_v25, %v795_v37  ;;  %v209_v44 = vrot.slane %v201_v26, %v795_v37 }
  0x83   :  { %v237_v31 = vpop.permute.xlu0 %236  ;;  %v213_v34 = vpop.permute.xlu1 %212 }
  0x84   :  { %v245_v43 = vrot.slane %v237_v31, %v795_v37  ;;  %v221_v45 = vrot.slane %v213_v34, %v795_v37 }
  0x86   :  { %v590_v50 = vcombine.low %v233_v42, %v245_v43  ;;  %v589_v53 = vcombine.low %v209_v44, %v221_v45 }
  0x87   :  { %v177_v39 = vpop.permute.xlu0 %176  ;;  %v189_v40 = vpop.permute.xlu1 %188 }
  0x88   :  { %v185_v46 = vrot.slane %v177_v39, %v795_v37  ;;  %v197_v47 = vrot.slane %v189_v40, %v795_v37 }
  0x8a   :  { %v588_v54 = vcombine.low %v185_v46, %v197_v47 }
  0x8b   :  { %v153_v51 = vpop.permute.xlu0 %152  ;;  %v165_v56 = vpop.permute.xlu1 %164 }
  0x8c   :  { %v161_v55 = vrot.slane %v153_v51, %v795_v37  ;;  %v173_v58 = vrot.slane %v165_v56, %v795_v37 }
  0x8e   :  { %v587_v0 = vcombine.low %v161_v55, %v173_v58 }
  0x8f   :  { %v483_v12 = vpop.permute.xlu1 %482  ;;  %v471_v13 = vpop.permute.xlu0 %470 }
  0x90   :  { %v479_v21 = vrot.slane %v471_v13, %v795_v37  ;;  %v491_v22 = vrot.slane %v483_v12, %v795_v37 }
  0x92   :  { %v602_v29 = vcombine.low %v479_v21, %v491_v22 }
  0x93   :  { %v459_v16 = vpop.permute.xlu1 %458  ;;  %v447_v18 = vpop.permute.xlu0 %446 }
  0x94   :  { %v455_v23 = vrot.slane %v447_v18, %v795_v37  ;;  %v467_v24 = vrot.slane %v459_v16, %v795_v37 }
  0x96   :  { %v601_v31 = vcombine.low %v455_v23, %v467_v24 }
  0x97   :  { %v435_v25 = vpop.permute.xlu1 %434  ;;  %v423_v27 = vpop.permute.xlu0 %422 }
  0x98   :  { %v431_v33 = vrot.slane %v423_v27, %v795_v37  ;;  %v443_v34 = vrot.slane %v435_v25, %v795_v37 }
  0x9a   :  { %v600_v43 = vcombine.low %v431_v33, %v443_v34 }
  0x9b   :  { %v399_v42 = vpop.permute.xlu0 %398 }
  0x9c   :  { %v407_v44 = vrot.slane %v399_v42, %v795_v37 }
  0xc6   :  { %v626_v30 = vpop.f32.mrf.mxu0 }
  0xc8   :  { %v107_v35 = vpop.f32.mrf.mxu0 }
  0xca   :  { %v627_v36 = vpop.f32.mrf.mxu0 }
  0xcb   :  { %v139_v59 = vpack.c.bf16 %v627_v36, %v626_v30 }
  0xcc   :  { %v110_v38 = vpop.f32.mrf.mxu0 }
  0xcd   :  { %v271_v2 = vadd.bf16 %v588_v54, %v139_v59  ;;  %v138_v3 = vpack.c.bf16 %v110_v38, %v107_v35  ;;  %v411_v38 = vpop.permute.xlu1 %410 }
  0xce   :  { %v630_v41 = vpop.f32.mrf.mxu0  ;;  %v419_v45 = vrot.slane %v411_v38, %v795_v37  ;;  %v524_v37 = vld [vmem:[%s846_s5] sm:$0x3] }
  0xcf   :  { %v270_v5 = vadd.bf16 %v587_v0, %v138_v3  ;;  %v275_v6 = vmax.bf16 %v675_v1, %v271_v2 }
  0xd0   :  { %v123_v48 = vpop.f32.mrf.mxu0 }
  0xd1   :  { %v274_v7 = vmax.bf16 %v675_v1, %v270_v5 }
  0xd2   :  { %v631_v49 = vpop.f32.mrf.mxu0 }
  0xd3   :  { %v141_v52 = vpack.c.bf16 %v631_v49, %v630_v41  ;;  %v599_v49 = vcombine.low %v407_v44, %v419_v45 }
  0xd4   :  { %v126_v57 = vpop.f32.mrf.mxu0 }
  0xd5   :  { %v273_v60 = vadd.bf16 %v590_v50, %v141_v52  ;;  %v140_v61 = vpack.c.bf16 %v126_v57, %v123_v48 }
  0xd7   :  { %v272_v62 = vadd.bf16 %v589_v53, %v140_v61  ;;  %v277_v63 = vmax.bf16 %v675_v1, %v273_v60  ;;  %v529_v53 = vpop.permute.xlu0 %528 }
  0xd9   :  { %632 = vmatprep.subr.bf16.mxu1 %v277_v63  ;;  %v276_v4 = vmax.bf16 %v675_v1, %v272_v62 }
  0xda   :  { %633 = vmatpush3.bf16.msra.mxu1 %v277_v63 }
  0xdb   :  { %634 = vmatprep.subr.bf16.mxu1 %v276_v4 }
  0xde   :  { %635 = vmatpush3.bf16.msra.mxu1 %v276_v4 }
  0xdf   :  { %636 = vmatprep.subr.bf16.mxu1 %v275_v6 }
  0xe2   :  { %637 = vmatpush3.bf16.msra.mxu1 %v275_v6 }
  0xe3   :  { %638 = vmatprep.subr.bf16.mxu1 %v274_v7 }
  0xe6   :  { %639 = vmatpush3.bf16.msra.mxu1 %v274_v7 }
  0xe9   :  { %641 = vmatmul.mubr.msk.bf16.vlgmr.msra.gmra.mxu1 %vm306_vm2, %v672_v8 }
  0xea   :  { %644 = vmatprep.mubr.msk.bf16.mxu1 %vm306_vm2, %v673_v9 }
  0xf1   :  { %645 = vmatmul.mubr.msk.bf16.gmra.mxu1 %vm306_vm2, %v674_v10 }
 0x1a9   :  { %v642_v14 = vpop.f32.mrf.mxu1 }
 0x1ab   :  { %v353_v15 = vpop.f32.mrf.mxu1 }
 0x1ad   :  { %v643_v17 = vpop.f32.mrf.mxu1 }
 0x1ae   :  { %v385_v39 = vpack.c.bf16 %v643_v17, %v642_v14 }
 0x1af   :  { %v356_v19 = vpop.f32.mrf.mxu1 }
 0x1b0   :  { %v517_v46 = vadd.bf16 %v600_v43, %v385_v39  ;;  %v384_v47 = vpack.c.bf16 %v356_v19, %v353_v15 }
 0x1b1   :  { %v646_v20 = vpop.f32.mrf.mxu1 }
 0x1b2   :  { %v521_v50 = vmax.bf16 %v675_v1, %v517_v46  ;;  %v516_v51 = vadd.bf16 %v599_v49, %v384_v47 }
 0x1b3   :  { %v369_v26 = vpop.f32.mrf.mxu1 }
 0x1b4   :  { %v520_v52 = vmax.bf16 %v675_v1, %v516_v51 }
 0x1b5   :  { %v647_v28 = vpop.f32.mrf.mxu1 }
 0x1b6   :  { %v387_v30 = vpack.c.bf16 %v647_v28, %v646_v20 }
 0x1b7   :  { %v372_v32 = vpop.f32.mrf.mxu1 }
 0x1b8   :  { %v519_v35 = vadd.bf16 %v602_v29, %v387_v30  ;;  %v386_v36 = vpack.c.bf16 %v372_v32, %v369_v26 }
 0x1ba   :  { %v523_v40 = vmax.bf16 %v675_v1, %v519_v35  ;;  %v518_v41 = vadd.bf16 %v601_v31, %v386_v36 }
 0x1bc   :  { %649 = vmatpush3.bf16.msra.mxu0 %v523_v40  ;;  %v522_v48 = vmax.bf16 %v675_v1, %v518_v41 }
 0x1bd   :  { %650 = vmatprep.subr.bf16.mxu0 %v677_v11 }
 0x1c0   :  { %651 = vmatpush3.bf16.msra.mxu0 %v522_v48 }
 0x1c1   :  { %652 = vmatprep.subr.bf16.mxu0 %v677_v11 }
 0x1c4   :  { %653 = vmatpush3.bf16.msra.mxu0 %v521_v50 }
 0x1c5   :  { %654 = vmatprep.subr.bf16.mxu0 %v677_v11 }
 0x1c8   :  { %655 = vmatpush3.bf16.msra.mxu0 %v520_v52 }
 0x1cb   :  { %657 = vmatmul.mubr.msk.bf16.vlgmr.msra.gmra.mxu0 %vm306_vm2, %v524_v37 }
 0x28b   :  { %v568_v54 = vpop.f32.mrf.mxu0 }
 0x28c   :  { %v569_v55 = vadd.f32 %v568_v54, %v529_v53 }
 0x28d   :  { %v658_v56 = vpop.f32.mrf.mxu0 }
 0x28e   :  { %574 = vst [vmem:[%s847_s7] sm:$0xf] %v569_v55 }
 0x28f   :  { %v571_v57 = vpop.f32.mrf.mxu0 }
 0x291   :  { %v659_v58 = vpop.f32.mrf.mxu0 }

</bundles_post_ra>
